<compile_context>
chip_gen: v7x
topology: tpu7x:2x2x1
jax: 0.10.0
libtpu: 0.0.40
codegen_flags: <defaults>
</compile_context>

<pallas_src>
import functools

import jax
import jax.numpy as jnp
from jax.experimental import pallas as pl
from jax.experimental.pallas import tpu as pltpu

LN_EPS = 1e-5


def _round_up(x, m):
    return ((x + m - 1) // m) * m


def embedding_kernel(x_ref, w_ref, b_ref, o_ref, *, in_dim):
    # x_ref: (TB, in_pad)  w_ref: (in_pad, out_pad)  b_ref: (1, out_pad)  o_ref: (TB, out_pad)
    x = x_ref[...].astype(jnp.float32)

    # LayerNorm over the true in_dim (elementwise_affine=False, biased variance).
    # Padded feature columns of x are zero, so they contribute nothing to the sums;
    # single fused pass over x: var = E[x^2] - mean^2 (halves XLU reduction work).
    inv_n = jnp.float32(1.0 / in_dim)
    s = jnp.sum(x, axis=1, keepdims=True)
    sq = jnp.sum(x * x, axis=1, keepdims=True)
    mean = s * inv_n
    var = jnp.maximum(sq * inv_n - mean * mean, 0.0)
    xn = (x - mean) * jax.lax.rsqrt(var + LN_EPS)
    # Padded columns of xn become (-mean)*rsqrt(...), but the matching (zero) rows
    # of the padded weight kill their matmul contribution.

    # Linear: feed the MXU operands in the stored parameter dtype (bf16-native on
    # all generations) and accumulate in f32.
    xn = xn.astype(w_ref.dtype)
    y = jnp.dot(xn, w_ref[...], preferred_element_type=jnp.float32)
    y = y + b_ref[...].astype(jnp.float32)

    # L2-normalize over the feature dim. Padded output columns are exactly zero,
    # so they don't change the norm. rsqrt -> EUP slot, then a single VPU multiply.
    sumsq = jnp.sum(y * y, axis=1, keepdims=True)
    o_ref[...] = (y * jax.lax.rsqrt(sumsq)).astype(o_ref.dtype)


def prepare_embedding_params(weight, bias):
    """One-time parameter prep (call at init, NOT per forward).

    weight: (out_dim, in_dim) PyTorch layout; bias: (out_dim,).
    Returns the pre-transposed, lane-padded (in_pad, out_pad) weight and (1, out_pad) bias.
    For best MXU throughput store these in bf16 when activations are bf16.
    """
    out_dim, in_dim = weight.shape
    in_pad = _round_up(in_dim, 128)
    out_pad = _round_up(out_dim, 128)
    w_t = jnp.zeros((in_pad, out_pad), weight.dtype).at[:in_dim, :out_dim].set(weight.T)
    b2d = jnp.zeros((1, out_pad), bias.dtype).at[0, :out_dim].set(bias)
    return w_t, b2d


@functools.partial(jax.jit, static_argnames=("in_dim", "out_dim", "tb"))
def embedding_forward(x, w_t, b2d, *, in_dim, out_dim, tb=256):
    """x: (B, in_dim); w_t/b2d from prepare_embedding_params. tb: batch tile
    (use 256 on v6e/v7x, 128 on v5e)."""
    B = x.shape[0]
    in_pad, out_pad = w_t.shape

    # Batch tile: multiple of 8 sublanes; clamp to the (padded) batch for tiny B.
    TB = min(tb, _round_up(B, 8))
    B_pad = _round_up(B, TB)

    # Zero padding is neutral (padded rows/cols are sliced away afterwards).
    x_p = jnp.pad(x, ((0, B_pad - B), (0, in_pad - in_dim)))

    grid = (B_pad // TB,)

    itemsize = jnp.dtype(x.dtype).itemsize
    cost = pl.CostEstimate(
        flops=2 * B_pad * in_pad * out_pad,
        transcendentals=2 * B_pad,  # one rsqrt per row for LN, one for L2-norm
        bytes_accessed=(B_pad * in_pad * itemsize
                        + w_t.size * jnp.dtype(w_t.dtype).itemsize
                        + b2d.size * jnp.dtype(b2d.dtype).itemsize
                        + B_pad * out_pad * itemsize),
    )

    out_p = pl.pallas_call(
        functools.partial(embedding_kernel, in_dim=in_dim),
        out_shape=jax.ShapeDtypeStruct((B_pad, out_pad), x.dtype),
        grid_spec=pltpu.PrefetchScalarGridSpec(
            num_scalar_prefetch=0,
            grid=grid,
            in_specs=[
                # batch tile streams with the grid (auto double-buffered pipeline)
                pl.BlockSpec((TB, in_pad), lambda i: (i, 0)),
                # weight / bias: constant block index -> fetched once, VMEM-resident
                # (on v7x's 64 MiB VMEM, keep these in bf16; optionally single-buffer
                #  the weight via pipeline_mode=pl.Buffered(1) if VMEM-tight).
                pl.BlockSpec((in_pad, out_pad), lambda i: (0, 0)),
                pl.BlockSpec((1, out_pad), lambda i: (0, 0)),
            ],
            out_specs=pl.BlockSpec((TB, out_pad), lambda i: (i, 0)),
        ),
        compiler_params=pltpu.CompilerParams(
            dimension_semantics=("parallel",)),  # v7x: shard batch tiles over both TCs
        cost_estimate=cost,
    )(x_p, w_t, b2d)

    return out_p[:B, :out_dim]


if __name__ == "__main__":
    key = jax.random.PRNGKey(0)
    k_x, k_w = jax.random.split(key)

    batch, in_dim, out_dim = 8, 32, 64

    # Deterministic inputs / params.
    x = jax.random.normal(k_x, (batch, in_dim), dtype=jnp.float32)

    # kaiming_normal_(a=0, mode='fan_out') for Linear: std = sqrt(2 / fan_out)
    w_std = (2.0 / out_dim) ** 0.5
    weight = jax.random.normal(k_w, (out_dim, in_dim), dtype=jnp.float32) * w_std
    bias = jnp.zeros((out_dim,), dtype=jnp.float32)

    # One-time parameter prep (transpose + lane padding hoisted out of forward).
    w_t, b2d = prepare_embedding_params(weight, bias)

    out = embedding_forward(x, w_t, b2d, in_dim=in_dim, out_dim=out_dim)
    jax.block_until_ready(out)

    # Pure-JAX reference check (PyTorch forward semantics).
    mean = jnp.mean(x, axis=1, keepdims=True)
    var = jnp.mean((x - mean) ** 2, axis=1, keepdims=True)
    xn = (x - mean) / jnp.sqrt(var + LN_EPS)
    y_ref = xn @ weight.T + bias
    y_ref = y_ref / jnp.linalg.norm(y_ref, axis=1, keepdims=True)

    assert out.shape == (batch, out_dim)
    assert jnp.allclose(out, y_ref, atol=1e-5, rtol=1e-5), "mismatch vs reference"

    print("KERNEL_OK")
</pallas_src>

<mosaic_0001>
module attributes {stable_mosaic.version = 11 : i64} {
  func.func @embedding_kernel(%arg0: i32, %arg1: memref<8x128xf32, #tpu.memory_space<vmem>>, %arg2: memref<128x128xf32, #tpu.memory_space<vmem>>, %arg3: memref<1x128xf32, #tpu.memory_space<vmem>>, %arg4: memref<8x128xf32, #tpu.memory_space<vmem>>) attributes {dimension_semantics = [#tpu.dimension_semantics<parallel>], iteration_bounds = array<i64: 1>, scalar_prefetch = 0 : i64, scratch_operands = 0 : i64, tpu.core_type = #tpu.core_type<tc>, window_params = [{transform_indices = @transform_0, window_bounds = array<i64: 8, 128>}, {pipeline_mode = #tpu.pipeline_mode<synchronous>, transform_indices = @transform_1, window_bounds = array<i64: 128, 128>}, {pipeline_mode = #tpu.pipeline_mode<synchronous>, transform_indices = @transform_2, window_bounds = array<i64: 1, 128>}, {transform_indices = @transform_3, window_bounds = array<i64: 8, 128>}]} {
    %c0 = arith.constant 0 : index
    %c0_0 = arith.constant 0 : index
    %0 = vector.load %arg1[%c0, %c0_0] : memref<8x128xf32, #tpu.memory_space<vmem>>, vector<8x128xf32>
    %cst = arith.constant dense<0.000000e+00> : vector<8xf32>
    %1 = vector.multi_reduction <add>, %0, %cst [1] : vector<8x128xf32> to vector<8xf32>
    %2 = vector.shape_cast %1 : vector<8xf32> to vector<8x1xf32>
    %3 = arith.mulf %0, %0 : vector<8x128xf32>
    %cst_1 = arith.constant dense<0.000000e+00> : vector<8xf32>
    %4 = vector.multi_reduction <add>, %3, %cst_1 [1] : vector<8x128xf32> to vector<8xf32>
    %5 = vector.shape_cast %4 : vector<8xf32> to vector<8x1xf32>
    %cst_2 = arith.constant 3.125000e-02 : f32
    %6 = vector.broadcast %cst_2 : f32 to vector<8x1xf32>
    %7 = arith.mulf %2, %6 : vector<8x1xf32>
    %cst_3 = arith.constant 3.125000e-02 : f32
    %8 = vector.broadcast %cst_3 : f32 to vector<8x1xf32>
    %9 = arith.mulf %5, %8 : vector<8x1xf32>
    %10 = arith.mulf %7, %7 : vector<8x1xf32>
    %11 = arith.subf %9, %10 : vector<8x1xf32>
    %cst_4 = arith.constant 0.000000e+00 : f32
    %12 = vector.broadcast %cst_4 : f32 to vector<8x1xf32>
    %13 = arith.maximumf %11, %12 : vector<8x1xf32>
    %14 = vector.broadcast %7 : vector<8x1xf32> to vector<8x128xf32>
    %15 = arith.subf %0, %14 : vector<8x128xf32>
    %cst_5 = arith.constant 9.99999974E-6 : f32
    %16 = vector.broadcast %cst_5 : f32 to vector<8x1xf32>
    %17 = arith.addf %13, %16 : vector<8x1xf32>
    %18 = math.rsqrt %17 : vector<8x1xf32>
    %19 = vector.broadcast %18 : vector<8x1xf32> to vector<8x128xf32>
    %20 = arith.mulf %15, %19 : vector<8x128xf32>
    %c0_6 = arith.constant 0 : index
    %c0_7 = arith.constant 0 : index
    %21 = vector.load %arg2[%c0_6, %c0_7] : memref<128x128xf32, #tpu.memory_space<vmem>>, vector<128x128xf32>
    %cst_8 = arith.constant dense<0.000000e+00> : vector<8x128xf32>
    %22 = tpu.matmul %20, %21, %cst_8 {dimension_numbers = #tpu.dot_dimension_numbers<[1], [0], [0], [1], [0, 0, 1, 1], [], []>} : vector<8x128xf32>, vector<128x128xf32>, vector<8x128xf32> -> vector<8x128xf32>
    %c0_9 = arith.constant 0 : index
    %c0_10 = arith.constant 0 : index
    %23 = vector.load %arg3[%c0_9, %c0_10] : memref<1x128xf32, #tpu.memory_space<vmem>>, vector<1x128xf32>
    %24 = vector.broadcast %23 : vector<1x128xf32> to vector<8x128xf32>
    %25 = arith.addf %22, %24 : vector<8x128xf32>
    %26 = arith.mulf %25, %25 : vector<8x128xf32>
    %cst_11 = arith.constant dense<0.000000e+00> : vector<8xf32>
    %27 = vector.multi_reduction <add>, %26, %cst_11 [1] : vector<8x128xf32> to vector<8xf32>
    %28 = vector.shape_cast %27 : vector<8xf32> to vector<8x1xf32>
    %29 = math.rsqrt %28 : vector<8x1xf32>
    %30 = vector.broadcast %29 : vector<8x1xf32> to vector<8x128xf32>
    %31 = arith.mulf %25, %30 : vector<8x128xf32>
    %c0_12 = arith.constant 0 : index
    %c0_13 = arith.constant 0 : index
    %32 = vector.load %arg4[%c0_12, %c0_13] : memref<8x128xf32, #tpu.memory_space<vmem>>, vector<8x128xf32>
    tpu.vector_store %arg4[%c0_12, %c0_13], %31 {strides = array<i32>} : memref<8x128xf32, #tpu.memory_space<vmem>>, vector<8x128xf32>,
    return
  }
  func.func @transform_0(%arg0: i32) -> (i32, i32) {
    %c0_i32 = arith.constant 0 : i32
    %c0_i32_0 = arith.constant 0 : i32
    return %arg0, %c0_i32 : i32, i32
  }
  func.func @transform_1(%arg0: i32) -> (i32, i32) {
    %c0_i32 = arith.constant 0 : i32
    %c0_i32_0 = arith.constant 0 : i32
    %c0_i32_1 = arith.constant 0 : i32
    return %c0_i32, %c0_i32_0 : i32, i32
  }
  func.func @transform_2(%arg0: i32) -> (i32, i32) {
    %c0_i32 = arith.constant 0 : i32
    %c0_i32_0 = arith.constant 0 : i32
    %c0_i32_1 = arith.constant 0 : i32
    return %c0_i32, %c0_i32_0 : i32, i32
  }
  func.func @transform_3(%arg0: i32) -> (i32, i32) {
    %c0_i32 = arith.constant 0 : i32
    %c0_i32_0 = arith.constant 0 : i32
    return %arg0, %c0_i32 : i32, i32
  }
}

</mosaic_0001>

<bundles_post_ra>
// kernel: embedding_forward.1
= control target key start
LH: loop header
LB: loop body
LE: loop exit
PB: predicated region body
PF: predicated region fallthrough
CT: control target
= control target key end

     0   :  { %8 = vsyncpa [#allocation3], 0  ;;  %s351_s0 = inlined_call_operand.vmem [shape: f32[8,128], index: 0, kind: input, shape index: {}]   ;;  %s352_s1 = inlined_call_operand.hbm [shape: f32[128,128], index: 1, kind: input, shape index: {}]   ;;  %s353_s2 = inlined_call_operand.vmem [shape: f32[1,128], index: 2, kind: input, shape index: {}]   ;;  %s354_s3 = inlined_call_operand.hbm [shape: f32[8,128], index: 3, kind: output, shape index: {}]  }
   0x1   :  { %9 = vsyncpa [#allocation4], 0  ;;  %s294_s12 = smov [#allocation2]   ;;  %s246_s16 = scalar_lea.hbm %s352_s1, 2048 }
   0x2   :  { %s17_s13 = sshll.u32 %s294_s12, 4  ;;  %p247_p0 = scmp.ne.s32.totalorder %s352_s1, %s246_s16  ;;  %s18_s13 = int_to_ptr.vmem [resolvable:$true] %s17_s13 }
   0x3   :  { %p250_p1 = scmp.lt.u32.totalorder %s246_s16, %s352_s1 }
   0x5   :  { %p252_p2 = pnand %p250_p1, %p247_p0 }
   0x7   :  { %255 = shalt.err (!%p252_p2)
}
   0x8   :  { %s256_s21 = scalar_lea.vmem %s18_s13, 2048  ;;  %p261_p4 = scmp.lt.s32.totalorder %s18_s13, %s18_s13 }
   0x9   :  { %p257_p3 = scmp.ne.s32.totalorder %s18_s13, %s256_s21  ;;  %p262_p5 = scmp.lt.s32.totalorder %s256_s21, %s256_s21 }
   0xb   :  { %p263_p6 = por %p262_p5, %p261_p4 }
   0xd   :  { %p264_p7 = pnand %p263_p6, %p257_p3 }
   0xf   :  { %267 = shalt.err (!%p264_p7)
}
  0x10   :  { %s295_s22 = smov 128   ;;  %s296_s23 = smov 8  }
  0x11   :  { %23 = dma.hbm_to_vmem [thread:$0]  %s352_s1, 2048, %s18_s13, [#allocation3], %s295_s22, %s295_s22, %s296_s23  }
  0x12   :  { %290 = dma.done.wait [#allocation3], 2048  }
  0x13   :  { %291 = vsyncadd [#allocation3], 4294965248  ;;  %v297_v0 = vmov 0.0|0.0   ;;  %v29_v1 = vld [vmem:[%s351_s0] sm:$0xff]  ;;  %v44_v2 = vld [vmem:[#allocation2] sm:$0xff]  ;;  %vm298_vm0 = vmmov 0  }
  0x14   :  { %211 = vmatprep.subr.bf16.mxu0 %v297_v0  ;;  %v45_v3 = vld [vmem:[#allocation2 + $0x8] sm:$0xff]  ;;  %30 = vadd.xlane.f32.xlu0 %v29_v1  ;;  %v32_v4 = vmul.f32 %v29_v1, %v29_v1  ;;  %v46_v6 = vld [vmem:[#allocation2 + $0x10] sm:$0xff]  ;;  %v47_v7 = vld [vmem:[#allocation2 + $0x18] sm:$0xff]  ;;  %v299_v23 = vmov 0.0   ;;  %s300_s28 = smov [#allocation5]  }
  0x15   :  { %v212_v5 = vpack.c.bf16 %v45_v3, %v44_v2  ;;  %v215_v8 = vpack.c.bf16 %v47_v7, %v46_v6  ;;  %v48_v9 = vld [vmem:[#allocation2 + $0x20] sm:$0xff]  ;;  %v49_v10 = vld [vmem:[#allocation2 + $0x28] sm:$0xff]  ;;  %v50_v12 = vld [vmem:[#allocation2 + $0x30] sm:$0xff]  ;;  %208 = vmatprep.mubr.msk.f32.mxu0 %vm298_vm0, %v299_v23  ;;  %s149_s29 = sshll.u32 %s300_s28, 4  ;;  %s150_s29 = int_to_ptr.vmem [resolvable:$true] %s149_s29 }
  0x16   :  { %v218_v11 = vpack.c.bf16 %v49_v10, %v48_v9  ;;  %v51_v13 = vld [vmem:[#allocation2 + $0x38] sm:$0xff]  ;;  %v52_v15 = vld [vmem:[#allocation2 + $0x40] sm:$0xff]  ;;  %v53_v16 = vld [vmem:[#allocation2 + $0x48] sm:$0xff]  ;;  %s268_s30 = scalar_lea.vmem %s150_s29, 128  ;;  %p273_p9 = scmp.lt.s32.totalorder %s150_s29, %s150_s29 }
  0x17   :  { %213 = vmatpush3.bf16.msra.mxu0 %v212_v5  ;;  %v221_v14 = vpack.c.bf16 %v51_v13, %v50_v12  ;;  %v224_v17 = vpack.c.bf16 %v53_v16, %v52_v15  ;;  %v54_v18 = vld [vmem:[#allocation2 + $0x50] sm:$0xff]  ;;  %v55_v19 = vld [vmem:[#allocation2 + $0x58] sm:$0xff]  ;;  %v56_v21 = vld [vmem:[#allocation2 + $0x60] sm:$0xff]  ;;  %p269_p8 = scmp.ne.s32.totalorder %s150_s29, %s268_s30  ;;  %p274_p10 = scmp.lt.s32.totalorder %s268_s30, %s268_s30 }
  0x18   :  { %214 = vmatprep.subr.bf16.mxu0 %v297_v0  ;;  %33 = vadd.xlane.f32.xlu0 %v32_v4  ;;  %v227_v20 = vpack.c.bf16 %v55_v19, %v54_v18  ;;  %v57_v22 = vld [vmem:[#allocation2 + $0x68] sm:$0xff]  ;;  %v58_v25 = vld [vmem:[#allocation2 + $0x70] sm:$0xff]  ;;  %v59_v26 = vld [vmem:[#allocation2 + $0x78] sm:$0xff] }
  0x19   :  { %v230_v24 = vpack.c.bf16 %v57_v22, %v56_v21  ;;  %v233_v27 = vpack.c.bf16 %v59_v26, %v58_v25  ;;  %v158_v39 = vld [vmem:[%s353_s2] ss:$0 sm:$0xff]  ;;  %p275_p11 = por %p274_p10, %p273_p9 }
  0x1b   :  { %216 = vmatpush3.bf16.msra.mxu0 %v215_v8  ;;  %p276_p12 = pnand %p275_p11, %p269_p8 }
  0x1c   :  { %217 = vmatprep.subr.bf16.mxu0 %v297_v0 }
  0x1f   :  { %219 = vmatpush3.bf16.msra.mxu0 %v218_v11 }
  0x20   :  { %220 = vmatprep.subr.bf16.mxu0 %v297_v0 }
  0x23   :  { %222 = vmatpush3.bf16.msra.mxu0 %v221_v14 }
  0x24   :  { %223 = vmatprep.subr.bf16.mxu0 %v297_v0 }
  0x27   :  { %225 = vmatpush3.bf16.msra.mxu0 %v224_v17 }
  0x28   :  { %226 = vmatprep.subr.bf16.mxu0 %v297_v0 }
  0x2b   :  { %228 = vmatpush3.bf16.msra.mxu0 %v227_v20 }
  0x2c   :  { %229 = vmatprep.subr.bf16.mxu0 %v297_v0 }
  0x2f   :  { %231 = vmatpush3.bf16.msra.mxu0 %v230_v24 }
  0x30   :  { %232 = vmatprep.subr.bf16.mxu0 %v297_v0 }
  0x33   :  { %234 = vmatpush3.bf16.msra.mxu0 %v233_v27 }
  0xa1   :  { %v31_v28 = vpop.xlane.xlu0 %30 }
  0xa2   :  { %v35_v29 = vmul.f32 0.03125, %v31_v28 }
  0xa4   :  { %v37_v31 = vmul.f32 %v35_v29, %v35_v29  ;;  %v40_v36 = vsub.f32 %v29_v1, %v35_v29 }
  0xa5   :  { %v34_v30 = vpop.xlane.xlu0 %33 }
  0xa6   :  { %v36_v32 = vmul.f32 0.03125, %v34_v30 }
  0xa8   :  { %v38_v33 = vsub.f32 %v36_v32, %v37_v31 }
  0xaa   :  { %v39_v34 = vmax.f32 %v38_v33, 0.0 }
  0xac   :  { %v41_v35 = vadd.f32 1e-05, %v39_v34 }
  0xae   :  { %242 = vrsqrt.f32 %v41_v35 }
  0xb8   :  { %v243_v37 = vpop.eup %242 }
  0xb9   :  { %v43_v38 = vmul.f32 %v243_v37, %v40_v36 }
  0xbb   :  { %209 = vmatmul.mubr.f32.vlgmr.msra.gmra.mrb[0].mxu0 %v43_v38 }
 0x18e   :  { %v133_v40 = vpop.f32.mrb[0].mxu0 }
 0x18f   :  { %v134_v41 = vadd.f32 %v158_v39, %v133_v40  ;;  %v210_v42 = vpop.f32.mrb[1].mxu0 }
 0x191   :  { %v137_v43 = vmul.f32 %v134_v41, %v134_v41 }
 0x193   :  { %138 = vadd.xlane.f32.xlu1 %v137_v43 }
 0x220   :  { %v139_v44 = vpop.xlane.xlu1 %138 }
 0x221   :  { %244 = vrsqrt.f32 %v139_v44 }
 0x22b   :  { %v245_v45 = vpop.eup %244 }
 0x22c   :  { %v141_v46 = vmul.f32 %v245_v45, %v134_v41 }
 0x22e   :  { %142 = vst [vmem:[#allocation5] sm:$0xff] %v141_v46 }
 0x22f   :  { %279 = shalt.err (!%p276_p12)
}
 0x230   :  { %s280_s5 = scalar_lea.hbm %s354_s3, 128 }
 0x231   :  { %p281_p13 = scmp.ne.s32.totalorder %s354_s3, %s280_s5  ;;  %p284_p0 = scmp.lt.u32.totalorder %s280_s5, %s354_s3 }
 0x233   :  { %p286_p1 = pnand %p284_p0, %p281_p13 }
 0x235   :  { %289 = shalt.err (!%p286_p1)
}
 0x236   :  { %152 = dma.vmem_to_hbm [thread:$0]  %s150_s29, 128, %s354_s3, [#allocation4]  }
 0x237   :  { %292 = dma.done.wait [#allocation4], 128  }
 0x238   :  { %293 = vsyncadd [#allocation4], 4294967168 }
 0x239   :  { %156 = vsyncpa [#allocation3], 1 }
 0x23a   :  { %157 = vsyncpa [#allocation4], 1 }

</bundles_post_ra>
